<compile_context>
chip_gen: v6e
topology: v6e:2x2x1
jax: 0.10.0
libtpu: 0.0.40
codegen_flags: <defaults>
</compile_context>

<pallas_src>
import functools

import jax
import jax.numpy as jnp
import numpy as np
from jax.experimental import pallas as pl
from jax.experimental.pallas import tpu as pltpu


def _merge_channels(p, client_id):
    """p: (5, TP) probabilities; returns merged (C, TP) per merge_prob()."""
    if client_id == 0:
        bg = p[0:1] + p[3:4] + p[4:5]
        return jnp.concatenate([bg, p[1:2], p[2:3]], axis=0)   # (3, TP)
    return p                                                    # (5, TP)


def _marginal_kernel(p_ref, lab_ref,
                     inter_ref, psum_ref, tsum_ref, ce_ref,
                     acc_inter, acc_psum, acc_tsum, acc_ce,
                     *, client_id, num_classes):
    """Grid = (N, pixel_blocks).  One step handles a (5, TP) / (1, TP) tile."""
    j = pl.program_id(1)

    @pl.when(j == 0)
    def _init():
        acc_inter[...] = jnp.zeros_like(acc_inter)
        acc_psum[...] = jnp.zeros_like(acc_psum)
        acc_tsum[...] = jnp.zeros_like(acc_tsum)
        acc_ce[...] = jnp.zeros_like(acc_ce)

    p = p_ref[0].astype(jnp.float32)       # (5, TP)
    lab = lab_ref[0]                       # (1, TP) int32 (-1 marks padding)

    mp = _merge_channels(p, client_id)     # (C, TP) merged probabilities
    C = num_classes

    cls = jax.lax.broadcasted_iota(jnp.int32, (C, mp.shape[-1]), 0)   # (C, TP)
    onehot = (cls == lab).astype(jnp.float32)                         # (C, TP)
    valid = (lab >= 0).astype(jnp.float32)                            # (1, TP)

    sel = mp * onehot                      # prob mass of the labelled class

    # lane-wise partial sums (VALU only; no cross-lane reduce per step)
    acc_inter[...] += sel
    acc_psum[...] += mp                    # padded pixels are zero already
    acc_tsum[...] += onehot

    # probability of the labelled class per pixel -> one log per pixel (EUP)
    p_y = jnp.sum(sel, axis=0, keepdims=True)                         # (1, TP)
    acc_ce[...] += -jnp.log(jnp.maximum(p_y, 1e-4)) * valid

    @pl.when(j == pl.num_programs(1) - 1)
    def _finish():
        inter_ref[...] = jnp.sum(acc_inter[...], axis=-1,
                                 keepdims=True).reshape(1, C, 1)
        psum_ref[...] = jnp.sum(acc_psum[...], axis=-1,
                                keepdims=True).reshape(1, C, 1)
        tsum_ref[...] = jnp.sum(acc_tsum[...], axis=-1,
                                keepdims=True).reshape(1, C, 1)
        ce_ref[...] = jnp.sum(acc_ce[...], axis=-1,
                              keepdims=True).reshape(1, 1, 1)


def marginal_loss_pallas(pred, target, client_id, *, max_pixel_block=8192):
    """pred: (N, 5, H, W) float32 softmax; target: (N, 1, H, W) int.

    `client_id` must be a static Python int (it selects the merge structure).
    Returns (ce_loss, dice_loss) as float32 scalars.
    """
    N, K, H, W = pred.shape
    assert K == 5, "Marginal_Loss expects 5 input channels"
    assert target.shape == (N, 1, H, W)
    client_id = int(client_id)
    C = 3 if client_id == 0 else 5
    HW = H * W

    # Free reshapes -- no transpose, pixels end up in the lane (last) axis.
    p3 = pred.reshape(N, K, HW).astype(jnp.float32)
    l3 = target.reshape(N, 1, HW).astype(jnp.int32)

    # Pad pixel axis to a multiple of 128 (pred with 0, labels with -1:
    # padded pixels contribute exactly 0 to every accumulated statistic).
    HW_pad = pl.cdiv(HW, 128) * 128
    if HW_pad != HW:
        p3 = jnp.pad(p3, ((0, 0), (0, 0), (0, HW_pad - HW)))
        l3 = jnp.pad(l3, ((0, 0), (0, 0), (0, HW_pad - HW)),
                     constant_values=-1)

    # Pixel block: largest multiple-of-128 divisor of HW_pad <= max_pixel_block.
    m = HW_pad // 128
    d_max = max(1, max_pixel_block // 128)
    d = 1
    for cand in range(min(m, d_max), 0, -1):
        if m % cand == 0:
            d = cand
            break
    TP = d * 128
    n_blocks = HW_pad // TP

    kernel = functools.partial(_marginal_kernel,
                               client_id=client_id, num_classes=C)

    out_shapes = (
        jax.ShapeDtypeStruct((N, C, 1), jnp.float32),   # intersection sums
        jax.ShapeDtypeStruct((N, C, 1), jnp.float32),   # pred sums
        jax.ShapeDtypeStruct((N, C, 1), jnp.float32),   # target (one-hot) sums
        jax.ShapeDtypeStruct((N, 1, 1), jnp.float32),   # NLL sum per sample
    )

    inter, psum, tsum, ce_sum = pl.pallas_call(
        kernel,
        out_shape=out_shapes,
        grid_spec=pltpu.PrefetchScalarGridSpec(
            num_scalar_prefetch=0,
            grid=(N, n_blocks),
            in_specs=[
                pl.BlockSpec((1, K, TP), lambda n, j: (n, 0, j)),
                pl.BlockSpec((1, 1, TP), lambda n, j: (n, 0, j)),
            ],
            out_specs=[
                pl.BlockSpec((1, C, 1), lambda n, j: (n, 0, 0)),
                pl.BlockSpec((1, C, 1), lambda n, j: (n, 0, 0)),
                pl.BlockSpec((1, C, 1), lambda n, j: (n, 0, 0)),
                pl.BlockSpec((1, 1, 1), lambda n, j: (n, 0, 0)),
            ],
            scratch_shapes=[
                pltpu.VMEM((C, TP), jnp.float32),
                pltpu.VMEM((C, TP), jnp.float32),
                pltpu.VMEM((C, TP), jnp.float32),
                pltpu.VMEM((1, TP), jnp.float32),
            ],
        ),
        compiler_params=pltpu.CompilerParams(
            dimension_semantics=("parallel", "arbitrary")),
    )(p3, l3)

    inter = inter[:, :, 0]   # (N, C)
    psum = psum[:, :, 0]
    tsum = tsum[:, :, 0]

    # MultiClassDiceLoss / DiceLoss tail (tiny, done in plain JAX).
    smooth = 1e-5
    dice = 2.0 * (inter + smooth) / (psum + tsum + smooth)    # (N, C)
    per_class_loss = 1.0 - jnp.mean(dice, axis=0)             # (C,)
    # TODO(synk): the reference calls MultiClassDiceLoss without its `weights`
    # argument (a TypeError in the original); we follow the weights=None path
    # and count_of_0 = 0, i.e. divide by C.
    dice_loss = jnp.sum(per_class_loss) / jnp.float32(C)

    # NLLLoss(reduction='mean') over all N*H*W pixels.
    ce_loss = jnp.sum(ce_sum) / jnp.float32(N * HW)
    return ce_loss, dice_loss


def marginal_loss_ref(pred, target, client_id):
    """Pure-JAX reference mirroring the PyTorch forward."""
    class_flag = [0, 1, 2] if client_id == 0 else [0, 1, 2, 3, 4]
    N = pred.shape[0]
    bg_list = [pred[:, 0:1]]
    for c in range(1, 5):
        if c not in class_flag:
            bg_list.append(pred[:, c:c + 1])
    bg = jnp.sum(jnp.concatenate(bg_list, axis=1), axis=1, keepdims=True)
    merged = [bg]
    for c, class_exist in enumerate(class_flag):
        if c > 0 and class_exist > 0:
            merged.append(pred[:, class_exist:class_exist + 1])
    mp = jnp.concatenate(merged, axis=1)                       # (N, C, H, W)
    C = mp.shape[1]

    lab = target[:, 0].astype(jnp.int32)                       # (N, H, W)
    onehot = jax.nn.one_hot(lab, C, axis=1, dtype=mp.dtype)    # (N, C, H, W)

    smooth = 1e-5
    ip = mp.reshape(N, C, -1)
    tg = onehot.reshape(N, C, -1)
    inter = jnp.sum(ip * tg, axis=-1)
    dice = 2.0 * (inter + smooth) / (jnp.sum(ip, -1) + jnp.sum(tg, -1) + smooth)
    dice_loss = jnp.sum(1.0 - jnp.mean(dice, axis=0)) / C

    logp = jnp.log(jnp.maximum(mp, 1e-4))
    ce_loss = -jnp.mean(jnp.take_along_axis(logp, lab[:, None, :, :], axis=1))
    return ce_loss, dice_loss


if __name__ == "__main__":
    key = jax.random.PRNGKey(0)
    k1, k2 = jax.random.split(key)

    N, K, H, W = 2, 5, 16, 16
    logits = jax.random.normal(k1, (N, K, H, W), dtype=jnp.float32)
    pred = jax.nn.softmax(logits, axis=1)                      # softmax probs
    # labels in [0, 3): valid in both merged spaces (C=3 and C=5)
    target = jax.random.randint(k2, (N, 1, H, W), 0, 3, dtype=jnp.int32)

    for client_id in (0, 1):
        ce, dl = marginal_loss_pallas(pred, target, client_id)
        ce = jax.block_until_ready(ce)
        dl = jax.block_until_ready(dl)
        ce_ref, dl_ref = marginal_loss_ref(pred, target, client_id)
        assert np.allclose(np.asarray(ce), np.asarray(ce_ref),
                           rtol=1e-5, atol=1e-5), (client_id, ce, ce_ref)
        assert np.allclose(np.asarray(dl), np.asarray(dl_ref),
                           rtol=1e-5, atol=1e-5), (client_id, dl, dl_ref)

    print("KERNEL_OK")
</pallas_src>

<mosaic_0001>
module attributes {stable_mosaic.version = 11 : i64} {
  func.func @_marginal_kernel(%arg0: i32, %arg1: i32, %arg2: memref<1x5x256xf32, #tpu.memory_space<vmem>>, %arg3: memref<1x1x256xi32, #tpu.memory_space<vmem>>, %arg4: memref<1x3x1xf32, #tpu.memory_space<vmem>>, %arg5: memref<1x3x1xf32, #tpu.memory_space<vmem>>, %arg6: memref<1x3x1xf32, #tpu.memory_space<vmem>>, %arg7: memref<1x1x1xf32, #tpu.memory_space<vmem>>, %arg8: memref<3x256xf32, #tpu.memory_space<vmem>>, %arg9: memref<3x256xf32, #tpu.memory_space<vmem>>, %arg10: memref<3x256xf32, #tpu.memory_space<vmem>>, %arg11: memref<1x256xf32, #tpu.memory_space<vmem>>) attributes {dimension_semantics = [#tpu.dimension_semantics<parallel>, #tpu.dimension_semantics<arbitrary>], iteration_bounds = array<i64: 2, 1>, scalar_prefetch = 0 : i64, scratch_operands = 4 : i64, tpu.core_type = #tpu.core_type<tc>, window_params = [{transform_indices = @transform_0, window_bounds = array<i64: 1, 5, 256>}, {transform_indices = @transform_1, window_bounds = array<i64: 1, 1, 256>}, {transform_indices = @transform_2, window_bounds = array<i64: 1, 3, 1>}, {transform_indices = @transform_3, window_bounds = array<i64: 1, 3, 1>}, {transform_indices = @transform_4, window_bounds = array<i64: 1, 3, 1>}, {transform_indices = @transform_5, window_bounds = array<i64: 1, 1, 1>}]} {
    %c0_i32 = arith.constant 0 : i32
    %0 = arith.cmpi eq, %arg1, %c0_i32 : i32
    %1 = arith.extui %0 : i1 to i32
    %c0_i32_0 = arith.constant 0 : i32
    %2 = arith.cmpi ne, %1, %c0_i32_0 : i32
    scf.if %2 {
      %cst_27 = arith.constant 0.000000e+00 : f32
      %48 = vector.broadcast %cst_27 : f32 to vector<3x256xf32>
      %c0_28 = arith.constant 0 : index
      %c0_29 = arith.constant 0 : index
      %49 = vector.load %arg8[%c0_28, %c0_29] : memref<3x256xf32, #tpu.memory_space<vmem>>, vector<3x256xf32>
      tpu.vector_store %arg8[%c0_28, %c0_29], %48 {strides = array<i32>} : memref<3x256xf32, #tpu.memory_space<vmem>>, vector<3x256xf32>,
      %cst_30 = arith.constant 0.000000e+00 : f32
      %50 = vector.broadcast %cst_30 : f32 to vector<3x256xf32>
      %c0_31 = arith.constant 0 : index
      %c0_32 = arith.constant 0 : index
      %51 = vector.load %arg9[%c0_31, %c0_32] : memref<3x256xf32, #tpu.memory_space<vmem>>, vector<3x256xf32>
      tpu.vector_store %arg9[%c0_31, %c0_32], %50 {strides = array<i32>} : memref<3x256xf32, #tpu.memory_space<vmem>>, vector<3x256xf32>,
      %cst_33 = arith.constant 0.000000e+00 : f32
      %52 = vector.broadcast %cst_33 : f32 to vector<3x256xf32>
      %c0_34 = arith.constant 0 : index
      %c0_35 = arith.constant 0 : index
      %53 = vector.load %arg10[%c0_34, %c0_35] : memref<3x256xf32, #tpu.memory_space<vmem>>, vector<3x256xf32>
      tpu.vector_store %arg10[%c0_34, %c0_35], %52 {strides = array<i32>} : memref<3x256xf32, #tpu.memory_space<vmem>>, vector<3x256xf32>,
      %cst_36 = arith.constant 0.000000e+00 : f32
      %54 = vector.broadcast %cst_36 : f32 to vector<1x256xf32>
      %c0_37 = arith.constant 0 : index
      %c0_38 = arith.constant 0 : index
      %55 = vector.load %arg11[%c0_37, %c0_38] : memref<1x256xf32, #tpu.memory_space<vmem>>, vector<1x256xf32>
      tpu.vector_store %arg11[%c0_37, %c0_38], %54 {strides = array<i32>} : memref<1x256xf32, #tpu.memory_space<vmem>>, vector<1x256xf32>,
    } else {
    }
    %c0 = arith.constant 0 : index
    %c0_1 = arith.constant 0 : index
    %c0_2 = arith.constant 0 : index
    %3 = vector.load %arg2[%c0, %c0_1, %c0_2] : memref<1x5x256xf32, #tpu.memory_space<vmem>>, vector<1x5x256xf32>
    %4 = vector.shape_cast %3 : vector<1x5x256xf32> to vector<5x256xf32>
    %c0_3 = arith.constant 0 : index
    %c0_4 = arith.constant 0 : index
    %c0_5 = arith.constant 0 : index
    %5 = vector.load %arg3[%c0_3, %c0_4, %c0_5] : memref<1x1x256xi32, #tpu.memory_space<vmem>>, vector<1x1x256xi32>
    %6 = vector.shape_cast %5 : vector<1x1x256xi32> to vector<1x256xi32>
    %7 = vector.extract_strided_slice %4 {offsets = [0, 0], sizes = [1, 256], strides = [1, 1]} : vector<5x256xf32> to vector<1x256xf32>
    %8 = vector.extract_strided_slice %4 {offsets = [3, 0], sizes = [1, 256], strides = [1, 1]} : vector<5x256xf32> to vector<1x256xf32>
    %9 = arith.addf %7, %8 : vector<1x256xf32>
    %10 = vector.extract_strided_slice %4 {offsets = [4, 0], sizes = [1, 256], strides = [1, 1]} : vector<5x256xf32> to vector<1x256xf32>
    %11 = arith.addf %9, %10 : vector<1x256xf32>
    %12 = vector.extract_strided_slice %4 {offsets = [1, 0], sizes = [1, 256], strides = [1, 1]} : vector<5x256xf32> to vector<1x256xf32>
    %13 = vector.extract_strided_slice %4 {offsets = [2, 0], sizes = [1, 256], strides = [1, 1]} : vector<5x256xf32> to vector<1x256xf32>
    %14 = tpu.concatenate %11, %12, %13 in 0 : vector<1x256xf32>, vector<1x256xf32>, vector<1x256xf32> -> vector<3x256xf32>
    %15 = tpu.iota {dimensions = array<i32: 0>} : vector<3x256xi32>
    %16 = vector.broadcast %6 : vector<1x256xi32> to vector<3x256xi32>
    %17 = arith.cmpi eq, %15, %16 : vector<3x256xi32>
    %18 = arith.extui %17 : vector<3x256xi1> to vector<3x256xi32>
    %19 = arith.sitofp %18 : vector<3x256xi32> to vector<3x256xf32>
    %c0_i32_6 = arith.constant 0 : i32
    %20 = vector.broadcast %c0_i32_6 : i32 to vector<1x256xi32>
    %21 = arith.cmpi sge, %6, %20 : vector<1x256xi32>
    %22 = arith.extui %21 : vector<1x256xi1> to vector<1x256xi32>
    %23 = arith.sitofp %22 : vector<1x256xi32> to vector<1x256xf32>
    %24 = arith.mulf %14, %19 : vector<3x256xf32>
    %c0_7 = arith.constant 0 : index
    %c0_8 = arith.constant 0 : index
    %25 = vector.load %arg8[%c0_7, %c0_8] : memref<3x256xf32, #tpu.memory_space<vmem>>, vector<3x256xf32>
    %26 = arith.addf %25, %24 : vector<3x256xf32>
    %c0_9 = arith.constant 0 : index
    %c0_10 = arith.constant 0 : index
    %27 = vector.load %arg8[%c0_9, %c0_10] : memref<3x256xf32, #tpu.memory_space<vmem>>, vector<3x256xf32>
    tpu.vector_store %arg8[%c0_9, %c0_10], %26 {strides = array<i32>} : memref<3x256xf32, #tpu.memory_space<vmem>>, vector<3x256xf32>,
    %c0_11 = arith.constant 0 : index
    %c0_12 = arith.constant 0 : index
    %28 = vector.load %arg9[%c0_11, %c0_12] : memref<3x256xf32, #tpu.memory_space<vmem>>, vector<3x256xf32>
    %29 = arith.addf %28, %14 : vector<3x256xf32>
    %c0_13 = arith.constant 0 : index
    %c0_14 = arith.constant 0 : index
    %30 = vector.load %arg9[%c0_13, %c0_14] : memref<3x256xf32, #tpu.memory_space<vmem>>, vector<3x256xf32>
    tpu.vector_store %arg9[%c0_13, %c0_14], %29 {strides = array<i32>} : memref<3x256xf32, #tpu.memory_space<vmem>>, vector<3x256xf32>,
    %c0_15 = arith.constant 0 : index
    %c0_16 = arith.constant 0 : index
    %31 = vector.load %arg10[%c0_15, %c0_16] : memref<3x256xf32, #tpu.memory_space<vmem>>, vector<3x256xf32>
    %32 = arith.addf %31, %19 : vector<3x256xf32>
    %c0_17 = arith.constant 0 : index
    %c0_18 = arith.constant 0 : index
    %33 = vector.load %arg10[%c0_17, %c0_18] : memref<3x256xf32, #tpu.memory_space<vmem>>, vector<3x256xf32>
    tpu.vector_store %arg10[%c0_17, %c0_18], %32 {strides = array<i32>} : memref<3x256xf32, #tpu.memory_space<vmem>>, vector<3x256xf32>,
    %cst = arith.constant dense<0.000000e+00> : vector<256xf32>
    %34 = vector.multi_reduction <add>, %24, %cst [0] : vector<3x256xf32> to vector<256xf32>
    %35 = vector.shape_cast %34 : vector<256xf32> to vector<1x256xf32>
    %c0_19 = arith.constant 0 : index
    %c0_20 = arith.constant 0 : index
    %36 = vector.load %arg11[%c0_19, %c0_20] : memref<1x256xf32, #tpu.memory_space<vmem>>, vector<1x256xf32>
    %cst_21 = arith.constant 9.99999974E-5 : f32
    %37 = vector.broadcast %cst_21 : f32 to vector<1x256xf32>
    %38 = arith.maximumf %35, %37 : vector<1x256xf32>
    %39 = math.log %38 : vector<1x256xf32>
    %cst_22 = arith.constant 0.000000e+00 : f32
    %40 = vector.broadcast %cst_22 : f32 to vector<1x256xf32>
    %41 = arith.subf %40, %39 : vector<1x256xf32>
    %42 = arith.mulf %41, %23 : vector<1x256xf32>
    %43 = arith.addf %36, %42 : vector<1x256xf32>
    %c0_23 = arith.constant 0 : index
    %c0_24 = arith.constant 0 : index
    %44 = vector.load %arg11[%c0_23, %c0_24] : memref<1x256xf32, #tpu.memory_space<vmem>>, vector<1x256xf32>
    tpu.vector_store %arg11[%c0_23, %c0_24], %43 {strides = array<i32>} : memref<1x256xf32, #tpu.memory_space<vmem>>, vector<1x256xf32>,
    %c0_i32_25 = arith.constant 0 : i32
    %45 = arith.cmpi eq, %arg1, %c0_i32_25 : i32
    %46 = arith.extui %45 : i1 to i32
    %c0_i32_26 = arith.constant 0 : i32
    %47 = arith.cmpi ne, %46, %c0_i32_26 : i32
    scf.if %47 {
      %c0_27 = arith.constant 0 : index
      %c0_28 = arith.constant 0 : index
      %48 = vector.load %arg8[%c0_27, %c0_28] : memref<3x256xf32, #tpu.memory_space<vmem>>, vector<3x256xf32>
      %cst_29 = arith.constant dense<0.000000e+00> : vector<3xf32>
      %49 = vector.multi_reduction <add>, %48, %cst_29 [1] : vector<3x256xf32> to vector<3xf32>
      %50 = vector.shape_cast %49 : vector<3xf32> to vector<3x1xf32>
      %51 = vector.shape_cast %50 : vector<3x1xf32> to vector<1x3x1xf32>
      %c0_30 = arith.constant 0 : index
      %c0_31 = arith.constant 0 : index
      %c0_32 = arith.constant 0 : index
      %52 = vector.load %arg4[%c0_30, %c0_31, %c0_32] : memref<1x3x1xf32, #tpu.memory_space<vmem>>, vector<1x3x1xf32>
      tpu.vector_store %arg4[%c0_30, %c0_31, %c0_32], %51 {strides = array<i32>} : memref<1x3x1xf32, #tpu.memory_space<vmem>>, vector<1x3x1xf32>,
      %c0_33 = arith.constant 0 : index
      %c0_34 = arith.constant 0 : index
      %53 = vector.load %arg9[%c0_33, %c0_34] : memref<3x256xf32, #tpu.memory_space<vmem>>, vector<3x256xf32>
      %cst_35 = arith.constant dense<0.000000e+00> : vector<3xf32>
      %54 = vector.multi_reduction <add>, %53, %cst_35 [1] : vector<3x256xf32> to vector<3xf32>
      %55 = vector.shape_cast %54 : vector<3xf32> to vector<3x1xf32>
      %56 = vector.shape_cast %55 : vector<3x1xf32> to vector<1x3x1xf32>
      %c0_36 = arith.constant 0 : index
      %c0_37 = arith.constant 0 : index
      %c0_38 = arith.constant 0 : index
      %57 = vector.load %arg5[%c0_36, %c0_37, %c0_38] : memref<1x3x1xf32, #tpu.memory_space<vmem>>, vector<1x3x1xf32>
      tpu.vector_store %arg5[%c0_36, %c0_37, %c0_38], %56 {strides = array<i32>} : memref<1x3x1xf32, #tpu.memory_space<vmem>>, vector<1x3x1xf32>,
      %c0_39 = arith.constant 0 : index
      %c0_40 = arith.constant 0 : index
      %58 = vector.load %arg10[%c0_39, %c0_40] : memref<3x256xf32, #tpu.memory_space<vmem>>, vector<3x256xf32>
      %cst_41 = arith.constant dense<0.000000e+00> : vector<3xf32>
      %59 = vector.multi_reduction <add>, %58, %cst_41 [1] : vector<3x256xf32> to vector<3xf32>
      %60 = vector.shape_cast %59 : vector<3xf32> to vector<3x1xf32>
      %61 = vector.shape_cast %60 : vector<3x1xf32> to vector<1x3x1xf32>
      %c0_42 = arith.constant 0 : index
      %c0_43 = arith.constant 0 : index
      %c0_44 = arith.constant 0 : index
      %62 = vector.load %arg6[%c0_42, %c0_43, %c0_44] : memref<1x3x1xf32, #tpu.memory_space<vmem>>, vector<1x3x1xf32>
      tpu.vector_store %arg6[%c0_42, %c0_43, %c0_44], %61 {strides = array<i32>} : memref<1x3x1xf32, #tpu.memory_space<vmem>>, vector<1x3x1xf32>,
      %c0_45 = arith.constant 0 : index
      %c0_46 = arith.constant 0 : index
      %63 = vector.load %arg11[%c0_45, %c0_46] : memref<1x256xf32, #tpu.memory_space<vmem>>, vector<1x256xf32>
      %cst_47 = arith.constant dense<0.000000e+00> : vector<1xf32>
      %64 = vector.multi_reduction <add>, %63, %cst_47 [1] : vector<1x256xf32> to vector<1xf32>
      %65 = vector.shape_cast %64 : vector<1xf32> to vector<1x1xf32>
      %66 = vector.shape_cast %65 : vector<1x1xf32> to vector<1x1x1xf32>
      %c0_48 = arith.constant 0 : index
      %c0_49 = arith.constant 0 : index
      %c0_50 = arith.constant 0 : index
      %67 = vector.load %arg7[%c0_48, %c0_49, %c0_50] : memref<1x1x1xf32, #tpu.memory_space<vmem>>, vector<1x1x1xf32>
      tpu.vector_store %arg7[%c0_48, %c0_49, %c0_50], %66 {strides = array<i32>} : memref<1x1x1xf32, #tpu.memory_space<vmem>>, vector<1x1x1xf32>,
    } else {
    }
    return
  }
  func.func @transform_0(%arg0: i32, %arg1: i32) -> (i32, i32, i32) {
    %c0_i32 = arith.constant 0 : i32
    %c0_i32_0 = arith.constant 0 : i32
    return %arg0, %c0_i32, %arg1 : i32, i32, i32
  }
  func.func @transform_1(%arg0: i32, %arg1: i32) -> (i32, i32, i32) {
    %c0_i32 = arith.constant 0 : i32
    %c0_i32_0 = arith.constant 0 : i32
    return %arg0, %c0_i32, %arg1 : i32, i32, i32
  }
  func.func @transform_2(%arg0: i32, %arg1: i32) -> (i32, i32, i32) {
    %c0_i32 = arith.constant 0 : i32
    %c0_i32_0 = arith.constant 0 : i32
    %c0_i32_1 = arith.constant 0 : i32
    return %arg0, %c0_i32, %c0_i32_0 : i32, i32, i32
  }
  func.func @transform_3(%arg0: i32, %arg1: i32) -> (i32, i32, i32) {
    %c0_i32 = arith.constant 0 : i32
    %c0_i32_0 = arith.constant 0 : i32
    %c0_i32_1 = arith.constant 0 : i32
    return %arg0, %c0_i32, %c0_i32_0 : i32, i32, i32
  }
  func.func @transform_4(%arg0: i32, %arg1: i32) -> (i32, i32, i32) {
    %c0_i32 = arith.constant 0 : i32
    %c0_i32_0 = arith.constant 0 : i32
    %c0_i32_1 = arith.constant 0 : i32
    return %arg0, %c0_i32, %c0_i32_0 : i32, i32, i32
  }
  func.func @transform_5(%arg0: i32, %arg1: i32) -> (i32, i32, i32) {
    %c0_i32 = arith.constant 0 : i32
    %c0_i32_0 = arith.constant 0 : i32
    %c0_i32_1 = arith.constant 0 : i32
    return %arg0, %c0_i32, %c0_i32_0 : i32, i32, i32
  }
}

</mosaic_0001>

<bundles_post_ra>
// kernel: tpu_custom_call.1
= control target key start
LH: loop header
LB: loop body
LE: loop exit
PB: predicated region body
PF: predicated region fallthrough
CT: control target
= control target key end

     0   :  { %s779_s18 = smov 0   ;;  %s781_s19 = smov 0   ;;  %s879_s0 = inlined_call_operand.vmem [shape: f32[2,5,256], index: 0, kind: input, shape index: {}]   ;;  %s880_s1 = inlined_call_operand.vmem [shape: s32[2,1,256], index: 1, kind: input, shape index: {}]   ;;  %s881_s2 = inlined_call_operand.vmem [shape: f32[2,3,1], index: 2, kind: output, shape index: {0}]   ;;  %s882_s3 = inlined_call_operand.vmem [shape: f32[2,3,1], index: 3, kind: output, shape index: {1}]   ;;  %s883_s4 = inlined_call_operand.vmem [shape: f32[2,3,1], index: 4, kind: output, shape index: {2}]   ;;  %s884_s5 = inlined_call_operand.vmem [shape: f32[2,1,1], index: 5, kind: output, shape index: {3}]  }
   0x1   :  { %s783_s20 = smov 0  }
   0x2 LB: > { %s28_s21 = sadd.s32 1, %s741_s19  ;;  %p677_p0 = scmp.ge.s32.totalorder %s745_s20, 1  ;;  %s745_s20 = sphi %s783_s20, %s16_s20   ;;  %s741_s19 = sphi %s781_s19, %s888_s19   ;;  %s737_s18 = sphi %s779_s18, %s887_s18  }
   0x3   : > { %p30_p1 = scmp.ge.s32.totalorder %s28_s21, 2  ;;  %p229_p2 = scmp.lt.s32.totalorder %s745_s20, 3 }
   0x5   : > { %s890_s21 = smov (%p30_p1, %s28_s21), 0  ;;  %p230_p3 = pnand %p677_p0, %p229_p2 }
   0x6   : > { %p280_p4 = scmp.lt.s32.totalorder (!%p230_p3), %s737_s18, 1 }
   0x7   : > { %233 = sbr.rel (%p230_p3) target bundleno = 223 (0xdf), region = 28 }
   0xc   : > { %v320_v0 = vlaneseq  ;;  %v747_v1 = vmov 0.0   ;;  %s892_s18 = smov (!%p280_p4, %s737_s18), 1  ;;  %vm342_vm3 = vcmask 1040384   ;;  %vm345_vm4 = vcmask 1041408  }
   0xd   : > { %319 = vst [vmem:[#allocation4] sm:$0x77] %v747_v1  ;;  %317 = vst [vmem:[#allocation2] sm:$0x77] %v747_v1  ;;  %s680_s22 = sshll.u32 %s892_s18, 1  ;;  %s689_s23 = sshll.u32 %s892_s18, 4 }
   0xe   : > { %318 = vst [vmem:[#allocation3] sm:$0x77] %v747_v1  ;;  %v802_v2 = vshrl.u32 %v320_v0, 7  ;;  %vm804_vm0 = vcmp.lt.s32.totalorder %v320_v0, 256  ;;  %s296_s26 = scalar_lea.vmem %s880_s1, %s680_s22  ;;  %s287_s29 = scalar_lea.vmem %s879_s0, %s689_s23  ;;  %vm390_vm5 = vcmask 1042432   ;;  %vm463_vm7 = vcmask 2048  }
   0xf   : > { %324 = vst.msk [vmem:[#allocation5] sm:$0x3] %vm804_vm0, %v747_v1  ;;  %v825_v6 = vld [vmem:[%s296_s26] sm:$0x3]  ;;  %v326_v8 = vld [vmem:[%s287_s29 + $0x8] sm:$0x1f]  ;;  %s312_s17 = scalar_lea.vmem %s884_s5, %s892_s18 }
  0x10   : > { %v813_v4 = vsub.s32 0, %v802_v2  ;;  %v816_v5 = vsub.s32 1, %v802_v2  ;;  %v325_v7 = vld [vmem:[%s287_s29] sm:$0x1f]  ;;  %v331_v12 = vrot.slane %v326_v8, 3  ;;  %v337_v14 = vrot.slane %v326_v8, 4 }
  0x11   : > { %v330_v11 = vrot.slane %v325_v7, 3  ;;  %v336_v13 = vrot.slane %v325_v7, 4  ;;  %vm364_vm6 = vcmp.ge.s32.totalorder %v825_v6, 0  ;;  %s681_s30 = sshll.u32 %s892_s18, 2  ;;  %vm502_vm8 = vcmask 0  }
  0x12   : > { %v353_v9 = vrot.slane %v825_v6, %v813_v4  ;;  %v357_v10 = vrot.slane %v825_v6, %v816_v5  ;;  %v335_v19 = vadd.f32 %v331_v12, %v326_v8  ;;  %s309_s8 = scalar_lea.vmem %s883_s4, %s681_s30  ;;  %s301_s11 = scalar_lea.vmem %s881_s2, %s681_s30 }
  0x13   : > { %v334_v18 = vadd.f32 %v330_v11, %v325_v7  ;;  %s305_s14 = scalar_lea.vmem %s882_s3, %s681_s30 }
  0x14   : > { %vm358_vm1 = vcmp.eq.s32.totalorder %v802_v2, %v353_v9  ;;  %vm359_vm2 = vcmp.eq.s32.totalorder %v802_v2, %v357_v10  ;;  %v383_v17 = vld [vmem:[#allocation4] sm:$0x77]  ;;  %v341_v22 = vadd.f32 %v337_v14, %v335_v19  ;;  %v369_v32 = vld [vmem:[#allocation2] sm:$0x77]  ;;  %v686_v9 = vsel %vm364_vm6, 1.0, %v747_v1 }
  0x15   : > { %v684_v15 = vsel %vm358_vm1, 1.0, %v747_v1  ;;  %v685_v16 = vsel %vm359_vm2, 1.0, %v747_v1  ;;  %v340_v21 = vadd.f32 %v336_v13, %v334_v18  ;;  %v376_v28 = vld [vmem:[#allocation3] sm:$0x77]  ;;  %v748_v10 = vmov 1966171168  }
  0x16   : > { %v386_v20 = vcombine.low %v684_v15, %v685_v16  ;;  %v344_v25 = vsel %vm342_vm3, %v341_v22, %v326_v8  ;;  %v431_v11 = vunpack.c.l.s4 %v748_v10  ;;  %v418_v14 = vrot.slane %v686_v9, %v813_v4 }
  0x17   : > { %v343_v24 = vsel %vm342_vm3, %v340_v21, %v325_v7  ;;  %v347_v27 = vsel %vm345_vm4, %v344_v25, %v326_v8 }
  0x18   : > { %v388_v23 = vadd.f32 %v386_v20, %v383_v17  ;;  %v346_v26 = vsel %vm345_vm4, %v343_v24, %v325_v7  ;;  %v368_v30 = vmul.f32 %v685_v16, %v347_v27  ;;  %v422_v16 = vrot.slane %v686_v9, %v816_v5  ;;  %v405_v24 = vld [vmem:[#allocation5] sm:$0x3] }
  0x19   : > { %v367_v29 = vmul.f32 %v684_v15, %v346_v26  ;;  %v379_v31 = vcombine.low %v346_v26, %v347_v27  ;;  %v432_v18 = vunpack.c.0.s8 %v431_v11 }
  0x1a   : > { %389 = vst [vmem:[#allocation4] sm:$0x77] %v388_v23  ;;  %v398_v35 = vsel %vm390_vm5, %v368_v30, 0.0 }
  0x1b   : > { %v372_v33 = vcombine.low %v367_v29, %v368_v30  ;;  %v391_v34 = vsel %vm390_vm5, %v367_v29, 0.0  ;;  %v381_v36 = vadd.f32 %v379_v31, %v376_v28  ;;  %v399_v38 = vrot.slane %v398_v35, 4 }
  0x1c   : > { %v392_v37 = vrot.slane %v391_v34, 4  ;;  %v435_v6 = vsub.s32 %v432_v18, %v802_v2 }
  0x1d   : > { %v374_v39 = vadd.f32 %v372_v33, %v369_v32  ;;  %382 = vst [vmem:[#allocation3] sm:$0x77] %v381_v36  ;;  %v400_v41 = vadd.f32 %v399_v38, %v398_v35 }
  0x1e   : > { %v393_v40 = vadd.f32 %v392_v37, %v391_v34 }
  0x1f   : > { %375 = vst [vmem:[#allocation2] sm:$0x77] %v374_v39  ;;  %v401_v46 = vrot.slane %v400_v41, 2 }
  0x20   : > { %v394_v45 = vrot.slane %v393_v40, 2 }
  0x21   : > { %v475_v42 = vld [vmem:[#allocation4] sm:$0x77]  ;;  %v402_v49 = vadd.f32 %v401_v46, %v400_v41 }
  0x22   : > { %v477_v43 = vcombine.high %v475_v42, %v475_v42  ;;  %v479_v44 = vsel %vm390_vm5, %v475_v42, 0.0  ;;  %v395_v48 = vadd.f32 %v394_v45, %v393_v40 }
  0x23   : > { %v403_v52 = vrot.slane %v402_v49, 1 }
  0x24   : > { %v480_v47 = vsel %vm390_vm5, %v477_v43, 0.0  ;;  %v396_v51 = vrot.slane %v395_v48, 1  ;;  %v465_v53 = vld [vmem:[#allocation3] sm:$0x77] }
  0x25   : > { %v481_v50 = vadd.f32 %v480_v47, %v479_v44  ;;  %v467_v54 = vcombine.high %v465_v53, %v465_v53  ;;  %v404_v56 = vadd.f32 %v403_v52, %v402_v49  ;;  %v469_v63 = vsel %vm390_vm5, %v465_v53, 0.0 }
  0x26   : > { %v397_v55 = vadd.f32 %v396_v51, %v395_v48  ;;  %v454_v57 = vld [vmem:[#allocation2] sm:$0x77] }
  0x27   : > { %482 = vadd.xlane.f32.xlu1 %v481_v50  ;;  %v456_v58 = vcombine.high %v454_v57, %v454_v57  ;;  %v458_v59 = vsel %vm390_vm5, %v454_v57, 0.0  ;;  %v407_v61 = vmax.f32 %v404_v56, 0.0001  ;;  %v470_v0 = vsel %vm390_vm5, %v467_v54, 0.0 }
  0x28   : > { %v406_v60 = vmax.f32 %v397_v55, 0.0001  ;;  %v471_v8 = vadd.f32 %v470_v0, %v469_v63 }
  0x29   : > { %v459_v62 = vsel %vm390_vm5, %v456_v58, 0.0 }
  0x2a   : > { %719 = vlog2.f32 %v406_v60  ;;  %v460_v7 = vadd.f32 %v459_v62, %v458_v59 }
  0x2b   : > { %721 = vlog2.f32 %v407_v61 }
  0x2c   : > { %461 = vadd.xlane.f32.xlu0 %v460_v7 }
  0x30   : > { %472 = vadd.xlane.f32.xlu0 %v471_v8 }
  0x37   : > { %v720_v12 = vpop.eup %719 }
  0x38   : > { %v722_v13 = vpop.eup %721  ;;  %v409_v15 = vmul.f32 0.6931472, %v720_v12 }
  0x39   : > { %v411_v17 = vmul.f32 0.6931472, %v722_v13 }
  0x3a   : > { %v412_v19 = vsub.f32 0.0, %v409_v15 }
  0x3b   : > { %v413_v20 = vsub.f32 0.0, %v411_v17 }
  0x3c   : > { %v425_v21 = vmul.f32 %v418_v14, %v412_v19 }
  0x3d   : > { %v426_v22 = vmul.f32 %v422_v16, %v413_v20 }
  0x3f   : > { %v429_v23 = vcombine.low %v425_v21, %v426_v22 }
  0x41   : > { %v436_v1 = vrot.slane %v429_v23, %v435_v6 }
  0x43   : > { %v443_v25 = vrot.slane %v436_v1, %v435_v6 }
  0x45   : > { %v445_v26 = vadd.f32 %v443_v25, %v405_v24 }
  0x47   : > { %450 = vst.msk [vmem:[#allocation5] sm:$0x3] %vm804_vm0, %v445_v26 }
  0x4e   : > { %v485_v27 = vld [vmem:[#allocation5] sm:$0x3] }
  0x4f   : > { %v490_v28 = vrot.slane %v485_v27, %v813_v4  ;;  %v494_v29 = vrot.slane %v485_v27, %v816_v5 }
  0x51   : > { %v497_v30 = vsel %vm342_vm3, %v490_v28, 0.0  ;;  %v498_v31 = vsel %vm342_vm3, %v494_v29, 0.0 }
  0x52   : > { %v499_v32 = vadd.f32 %v498_v31, %v497_v30 }
  0x54   : > { %500 = vadd.xlane.f32.xlu1 %v499_v32 }
  0xb0   : > { %v483_v2 = vpop.xlane.xlu1 %482 }
  0xb1   : > { %484 = vst.msk [vmem:[%s309_s8] sm:$0x7] %vm463_vm7, %v483_v2 }
  0xb5   : > { %v462_v3 = vpop.xlane.xlu0 %461 }
  0xb6   : > { %464 = vst.msk [vmem:[%s301_s11] sm:$0x7] %vm463_vm7, %v462_v3 }
  0xb9   : > { %v473_v4 = vpop.xlane.xlu0 %472 }
  0xba   : > { %474 = vst.msk [vmem:[%s305_s14] sm:$0x7] %vm463_vm7, %v473_v4 }
  0xdd   : > { %v501_v5 = vpop.xlane.xlu1 %500 }
  0xde   : > { %503 = vst.msk [vmem:[%s312_s17] sm:$0x1] %vm502_vm8, %v501_v5 }
  0xdf PF: > { %s16_s20 = sadd.s32 1, %s745_s20   ;;  %s887_s18 = smov %s741_s19 }
  0xe0   : > { %p13_p5 = scmp.ge.s32.totalorder %s16_s20, 4   ;;  %s888_s19 = smov %s890_s21 }
  0xe2   :  { %15 = sbr.rel (!%p13_p5) target bundleno = 2 (0x2), region = 105 }

</bundles_post_ra>
